<compile_context>
chip_gen: v7x
topology: tpu7x:2x2x1
jax: 0.10.0
libtpu: 0.0.40
codegen_flags: <defaults>
</compile_context>

<pallas_src>
import jax
import jax.numpy as jnp
from jax import lax
from jax.experimental import pallas as pl
from jax.experimental.pallas import tpu as pltpu


def _up_pool_decoder_kernel(x_ref, wct_ref, bct_ref, wproj_ref, bproj_ref, out_ref):
    # x_ref:     (1, 1, Lt)  f32 — input positions for this (batch, L-tile) step
    # wct_ref:   (D, P)      f32 — ConvTranspose1d weight (in-channel dim squeezed)
    # bct_ref:   (D, 1)      f32 — ConvTranspose1d bias
    # wproj_ref: (1, D)      f32 — out_proj weight
    # bproj_ref: (1, 1)      f32 — out_proj bias
    # out_ref:   (1, 1, Tt)  f32 — fused output tile, Tt = Lt * P (lane-dense)
    Lt = x_ref.shape[-1]
    D, P = wct_ref.shape
    Tt = Lt * P
    f32 = jnp.float32

    # R[l, t] = 1 iff l*P <= t < (l+1)*P  (i.e. t // P == l); built with mul/cmp only.
    t_ids = lax.broadcasted_iota(jnp.int32, (Lt, Tt), 1)
    l_ids = lax.broadcasted_iota(jnp.int32, (Lt, Tt), 0)
    lo = l_ids * P
    repeat_mat = ((t_ids >= lo) & (t_ids < lo + P)).astype(f32)            # (Lt, Tt)

    x = x_ref[0, :, :]                                                     # (1, Lt)
    l_row = lax.broadcasted_iota(jnp.int32, (1, Lt), 1).astype(f32)        # [0, Lt)

    # MXU "gathers": x[t // P] and the block index t // P (exact small ints in f32).
    x_rep = jnp.dot(x, repeat_mat, preferred_element_type=f32)             # (1, Tt)
    t_div = jnp.dot(l_row, repeat_mat, preferred_element_type=f32)         # (1, Tt)

    # Q[k, t] = 1 iff t % P == k, via t % P = t - P*(t // P) (no vector int div/mod).
    t_row = lax.broadcasted_iota(jnp.int32, (1, Tt), 1).astype(f32)
    t_mod = t_row - t_div * float(P)                                       # (1, Tt)
    k_ids = lax.broadcasted_iota(jnp.int32, (P, Tt), 0).astype(f32)
    tile_mat = (k_ids == t_mod).astype(f32)                                # (P, Tt)

    # ConvTranspose1d slab, already in (d_model, time) orientation — no transposes.
    w_til = jnp.dot(wct_ref[...], tile_mat, preferred_element_type=f32)    # W[d, t % P]
    up = x_rep * w_til + bct_ref[...]                                      # (D, Tt)

    # out_proj: contract d_model on the MXU; result is (time)-major already.
    y = jnp.dot(wproj_ref[...], up, preferred_element_type=f32) + bproj_ref[...]
    out_ref[0, :, :] = y.astype(out_ref.dtype)                             # (1, Tt)


def _pick_l_tile(L, P, max_out_lanes=2048):
    """Largest L-tile whose output block is <= max_out_lanes lanes. When tiling, the
    tile must be a multiple of 128 (lane-dense blocks) and divide L; otherwise fall
    back to the full L (block == full array dim is always legal)."""
    if L * P <= max_out_lanes:
        return L
    best = None
    cand = 128
    while cand <= L and cand * P <= max_out_lanes:
        if L % cand == 0:
            best = cand
        cand += 128
    return best if best is not None else L


def up_pool_decoder_forward(x, w_ct, b_ct, w_proj, b_proj):
    """x: (B, L) float. Returns (B, L*pool, 1) f32 (matches the PyTorch output)."""
    x = jnp.asarray(x, jnp.float32)
    B, L = x.shape
    _, D, P = w_ct.shape                     # ConvTranspose1d weight: (1, d_model, pool)
    T = L * P

    wct2 = w_ct.reshape(D, P).astype(jnp.float32)
    bct2 = b_ct.reshape(D, 1).astype(jnp.float32)
    wproj2 = w_proj.reshape(1, D).astype(jnp.float32)
    bproj2 = jnp.asarray(b_proj, jnp.float32).reshape(1, 1)

    Lt = _pick_l_tile(L, P)
    Tt = Lt * P
    nL = L // Lt

    x3 = x.reshape(B, 1, L)                  # free metadata reshape for TPU tiling

    out3 = pl.pallas_call(
        _up_pool_decoder_kernel,
        out_shape=jax.ShapeDtypeStruct((B, 1, T), jnp.float32),
        grid_spec=pltpu.PrefetchScalarGridSpec(
            num_scalar_prefetch=0,
            grid=(B, nL),
            in_specs=[
                pl.BlockSpec((1, 1, Lt), lambda b, l: (b, 0, l)),
                pl.BlockSpec((D, P), lambda b, l: (0, 0)),
                pl.BlockSpec((D, 1), lambda b, l: (0, 0)),
                pl.BlockSpec((1, D), lambda b, l: (0, 0)),
                pl.BlockSpec((1, 1), lambda b, l: (0, 0)),
            ],
            out_specs=pl.BlockSpec((1, 1, Tt), lambda b, l: (b, 0, l)),
        ),
        compiler_params=pltpu.CompilerParams(
            dimension_semantics=("parallel", "parallel"),   # both shard across v7x cores
            vmem_limit_bytes=32 * 1024 * 1024,              # bounded tiles; v7x headroom
        ),
    )(x3, wct2, bct2, wproj2, bproj2)

    # Free reshapes: (B, 1, T) -> (B, T, 1), matching PyTorch's out_proj output layout.
    return out3.reshape(B, T, 1)


class UpPoolDecoderPallas:
    """JAX/Pallas port of UpPoolDecoder: ConvTranspose1d(1 -> d_model, k=pool, s=pool)
    followed by Linear(d_model -> 1), fused into a single TPU kernel."""

    def __init__(self, d_model, pool, key=None):
        self.d_model = d_model
        self.pool = pool
        if key is None:
            key = jax.random.PRNGKey(0)
        k1, k2, k3, k4 = jax.random.split(key, 4)
        bound_ct = 1.0 / float(pool) ** 0.5
        self.w_ct = jax.random.uniform(k1, (1, d_model, pool), jnp.float32,
                                       -bound_ct, bound_ct)
        self.b_ct = jax.random.uniform(k2, (d_model,), jnp.float32, -bound_ct, bound_ct)
        bound_pr = 1.0 / float(d_model) ** 0.5
        self.w_proj = jax.random.uniform(k3, (1, d_model), jnp.float32,
                                         -bound_pr, bound_pr)
        self.b_proj = jax.random.uniform(k4, (1,), jnp.float32, -bound_pr, bound_pr)

    def __call__(self, x, state=None):
        # NOTE: the PyTorch `if x.dim == 3` branch is dead code (method vs int compare),
        # so the effective input is 2-D (B, L).
        return up_pool_decoder_forward(x, self.w_ct, self.b_ct, self.w_proj, self.b_proj)


if __name__ == "__main__":
    key = jax.random.PRNGKey(0)
    k_params, k_x = jax.random.split(key)

    d_model, pool = 32, 4
    B, L = 2, 16

    dec = UpPoolDecoderPallas(d_model, pool, key=k_params)
    x = jax.random.normal(k_x, (B, L), dtype=jnp.float32)

    out = jax.block_until_ready(dec(x))
    assert out.shape == (B, L * pool, 1), out.shape

    # Pure-JAX reference of the PyTorch forward (conv_t -> transpose -> out_proj).
    wct = dec.w_ct.reshape(d_model, pool)
    up = (x[:, None, :, None] * wct[None, :, None, :]
          + dec.b_ct[None, :, None, None])                    # (B, D, L, P)
    up = up.reshape(B, d_model, L * pool)                     # conv_t output (B, D, T)
    ref = (jnp.einsum('bdt,d->bt', up, dec.w_proj[0]) + dec.b_proj[0])[..., None]

    assert jnp.allclose(out, ref, atol=1e-5, rtol=1e-5), \
        float(jnp.max(jnp.abs(out - ref)))
    print("KERNEL_OK")
</pallas_src>

<mosaic_0001>
module attributes {stable_mosaic.version = 11 : i64} {
  func.func @_up_pool_decoder_kernel(%arg0: i32, %arg1: i32, %arg2: memref<1x1x16xf32, #tpu.memory_space<vmem>>, %arg3: memref<32x4xf32, #tpu.memory_space<vmem>>, %arg4: memref<32x1xf32, #tpu.memory_space<vmem>>, %arg5: memref<1x32xf32, #tpu.memory_space<vmem>>, %arg6: memref<1x1xf32, #tpu.memory_space<vmem>>, %arg7: memref<1x1x64xf32, #tpu.memory_space<vmem>>) attributes {dimension_semantics = [#tpu.dimension_semantics<parallel>, #tpu.dimension_semantics<parallel>], iteration_bounds = array<i64: 2, 1>, scalar_prefetch = 0 : i64, scratch_operands = 0 : i64, tpu.core_type = #tpu.core_type<tc>, window_params = [{transform_indices = @transform_0, window_bounds = array<i64: 1, 1, 16>}, {pipeline_mode = #tpu.pipeline_mode<synchronous>, transform_indices = @transform_1, window_bounds = array<i64: 32, 4>}, {pipeline_mode = #tpu.pipeline_mode<synchronous>, transform_indices = @transform_2, window_bounds = array<i64: 32, 1>}, {pipeline_mode = #tpu.pipeline_mode<synchronous>, transform_indices = @transform_3, window_bounds = array<i64: 1, 32>}, {pipeline_mode = #tpu.pipeline_mode<synchronous>, transform_indices = @transform_4, window_bounds = array<i64: 1, 1>}, {transform_indices = @transform_5, window_bounds = array<i64: 1, 1, 64>}]} {
    %0 = tpu.iota {dimensions = array<i32: 1>} : vector<16x64xi32>
    %1 = tpu.iota {dimensions = array<i32: 0>} : vector<16x64xi32>
    %c4_i32 = arith.constant 4 : i32
    %2 = vector.broadcast %c4_i32 : i32 to vector<16x64xi32>
    %3 = arith.muli %1, %2 : vector<16x64xi32>
    %4 = arith.cmpi sge, %0, %3 : vector<16x64xi32>
    %c4_i32_0 = arith.constant 4 : i32
    %5 = vector.broadcast %c4_i32_0 : i32 to vector<16x64xi32>
    %6 = arith.addi %3, %5 : vector<16x64xi32>
    %7 = arith.cmpi slt, %0, %6 : vector<16x64xi32>
    %8 = arith.andi %4, %7 : vector<16x64xi1>
    %9 = arith.extui %8 : vector<16x64xi1> to vector<16x64xi32>
    %10 = arith.sitofp %9 : vector<16x64xi32> to vector<16x64xf32>
    %c0 = arith.constant 0 : index
    %c0_1 = arith.constant 0 : index
    %c0_2 = arith.constant 0 : index
    %11 = vector.load %arg2[%c0, %c0_1, %c0_2] : memref<1x1x16xf32, #tpu.memory_space<vmem>>, vector<1x1x16xf32>
    %12 = vector.shape_cast %11 : vector<1x1x16xf32> to vector<1x16xf32>
    %13 = tpu.iota {dimensions = array<i32: 1>} : vector<1x16xi32>
    %14 = arith.sitofp %13 : vector<1x16xi32> to vector<1x16xf32>
    %cst = arith.constant dense<0.000000e+00> : vector<1x64xf32>
    %15 = tpu.matmul %12, %10, %cst {dimension_numbers = #tpu.dot_dimension_numbers<[1], [0], [0], [1], [0, 0, 1, 1], [], []>} : vector<1x16xf32>, vector<16x64xf32>, vector<1x64xf32> -> vector<1x64xf32>
    %cst_3 = arith.constant dense<0.000000e+00> : vector<1x64xf32>
    %16 = tpu.matmul %14, %10, %cst_3 {dimension_numbers = #tpu.dot_dimension_numbers<[1], [0], [0], [1], [0, 0, 1, 1], [], []>} : vector<1x16xf32>, vector<16x64xf32>, vector<1x64xf32> -> vector<1x64xf32>
    %17 = tpu.iota {dimensions = array<i32: 1>} : vector<1x64xi32>
    %18 = arith.sitofp %17 : vector<1x64xi32> to vector<1x64xf32>
    %cst_4 = arith.constant 4.000000e+00 : f32
    %19 = vector.broadcast %cst_4 : f32 to vector<1x64xf32>
    %20 = arith.mulf %16, %19 : vector<1x64xf32>
    %21 = arith.subf %18, %20 : vector<1x64xf32>
    %22 = tpu.iota {dimensions = array<i32: 0>} : vector<4x64xi32>
    %23 = arith.sitofp %22 : vector<4x64xi32> to vector<4x64xf32>
    %24 = vector.broadcast %21 : vector<1x64xf32> to vector<4x64xf32>
    %25 = arith.cmpf oeq, %23, %24 : vector<4x64xf32>
    %26 = arith.extui %25 : vector<4x64xi1> to vector<4x64xi32>
    %27 = arith.sitofp %26 : vector<4x64xi32> to vector<4x64xf32>
    %c0_5 = arith.constant 0 : index
    %c0_6 = arith.constant 0 : index
    %28 = vector.load %arg3[%c0_5, %c0_6] : memref<32x4xf32, #tpu.memory_space<vmem>>, vector<32x4xf32>
    %cst_7 = arith.constant dense<0.000000e+00> : vector<32x64xf32>
    %29 = tpu.matmul %28, %27, %cst_7 {dimension_numbers = #tpu.dot_dimension_numbers<[1], [0], [0], [1], [0, 0, 1, 1], [], []>} : vector<32x4xf32>, vector<4x64xf32>, vector<32x64xf32> -> vector<32x64xf32>
    %30 = vector.broadcast %15 : vector<1x64xf32> to vector<32x64xf32>
    %31 = arith.mulf %30, %29 : vector<32x64xf32>
    %c0_8 = arith.constant 0 : index
    %c0_9 = arith.constant 0 : index
    %32 = vector.load %arg4[%c0_8, %c0_9] : memref<32x1xf32, #tpu.memory_space<vmem>>, vector<32x1xf32>
    %33 = vector.broadcast %32 : vector<32x1xf32> to vector<32x64xf32>
    %34 = arith.addf %31, %33 : vector<32x64xf32>
    %c0_10 = arith.constant 0 : index
    %c0_11 = arith.constant 0 : index
    %35 = vector.load %arg5[%c0_10, %c0_11] : memref<1x32xf32, #tpu.memory_space<vmem>>, vector<1x32xf32>
    %cst_12 = arith.constant dense<0.000000e+00> : vector<1x64xf32>
    %36 = tpu.matmul %35, %34, %cst_12 {dimension_numbers = #tpu.dot_dimension_numbers<[1], [0], [0], [1], [0, 0, 1, 1], [], []>} : vector<1x32xf32>, vector<32x64xf32>, vector<1x64xf32> -> vector<1x64xf32>
    %c0_13 = arith.constant 0 : index
    %c0_14 = arith.constant 0 : index
    %37 = vector.load %arg6[%c0_13, %c0_14] : memref<1x1xf32, #tpu.memory_space<vmem>>, vector<1x1xf32>
    %38 = vector.broadcast %37 : vector<1x1xf32> to vector<1x64xf32>
    %39 = arith.addf %36, %38 : vector<1x64xf32>
    %c0_15 = arith.constant 0 : index
    %c0_16 = arith.constant 0 : index
    %c0_17 = arith.constant 0 : index
    %40 = vector.load %arg7[%c0_15, %c0_16, %c0_17] : memref<1x1x64xf32, #tpu.memory_space<vmem>>, vector<1x1x64xf32>
    %41 = vector.shape_cast %40 : vector<1x1x64xf32> to vector<1x64xf32>
    %42 = vector.shape_cast %39 : vector<1x64xf32> to vector<1x1x64xf32>
    tpu.vector_store %arg7[%c0_15, %c0_16, %c0_17], %42 {strides = array<i32>} : memref<1x1x64xf32, #tpu.memory_space<vmem>>, vector<1x1x64xf32>,
    return
  }
  func.func @transform_0(%arg0: i32, %arg1: i32) -> (i32, i32, i32) {
    %c0_i32 = arith.constant 0 : i32
    %c0_i32_0 = arith.constant 0 : i32
    return %arg0, %c0_i32, %arg1 : i32, i32, i32
  }
  func.func @transform_1(%arg0: i32, %arg1: i32) -> (i32, i32) {
    %c0_i32 = arith.constant 0 : i32
    %c0_i32_0 = arith.constant 0 : i32
    %c0_i32_1 = arith.constant 0 : i32
    return %c0_i32, %c0_i32_0 : i32, i32
  }
  func.func @transform_2(%arg0: i32, %arg1: i32) -> (i32, i32) {
    %c0_i32 = arith.constant 0 : i32
    %c0_i32_0 = arith.constant 0 : i32
    %c0_i32_1 = arith.constant 0 : i32
    return %c0_i32, %c0_i32_0 : i32, i32
  }
  func.func @transform_3(%arg0: i32, %arg1: i32) -> (i32, i32) {
    %c0_i32 = arith.constant 0 : i32
    %c0_i32_0 = arith.constant 0 : i32
    %c0_i32_1 = arith.constant 0 : i32
    return %c0_i32, %c0_i32_0 : i32, i32
  }
  func.func @transform_4(%arg0: i32, %arg1: i32) -> (i32, i32) {
    %c0_i32 = arith.constant 0 : i32
    %c0_i32_0 = arith.constant 0 : i32
    %c0_i32_1 = arith.constant 0 : i32
    return %c0_i32, %c0_i32_0 : i32, i32
  }
  func.func @transform_5(%arg0: i32, %arg1: i32) -> (i32, i32, i32) {
    %c0_i32 = arith.constant 0 : i32
    %c0_i32_0 = arith.constant 0 : i32
    return %arg0, %c0_i32, %arg1 : i32, i32, i32
  }
}

</mosaic_0001>

<bundles_post_ra>
// kernel: tpu_custom_call.1
= control target key start
LH: loop header
LB: loop body
LE: loop exit
PB: predicated region body
PF: predicated region fallthrough
CT: control target
= control target key end

     0   :  { %s1143_s0 = inlined_call_operand.vmem [shape: f32[2,1,16], index: 0, kind: input, shape index: {}]   ;;  %s1144_s1 = inlined_call_operand.vmem [shape: f32[32,4], index: 1, kind: input, shape index: {}]   ;;  %s1145_s2 = inlined_call_operand.vmem [shape: f32[32,1], index: 2, kind: input, shape index: {}]   ;;  %s1146_s3 = inlined_call_operand.vmem [shape: f32[1,32], index: 3, kind: input, shape index: {}]   ;;  %s1147_s4 = inlined_call_operand.<no memory space> [shape: f32[1,1], index: 4, kind: input, shape index: {}]   ;;  %s1148_s5 = inlined_call_operand.hbm [shape: f32[2,1,64], index: 5, kind: output, shape index: {}]  }
   0x1   :  { %v10_v0 = vstv %s1147_s4 }
   0x2   :  { %11 = vst [vmem:[#allocation2] sm:$0x1] %v10_v0 }
   0x3   :  { %12 = vsyncpa [#allocation4], 0 }
   0x4   :  { %14 = vsyncpa [#allocation4 + $0x1], 0  ;;  %s993_s20 = smov 0   ;;  %s995_s21 = smov 0  }
   0x5   :  { %s997_s22 = smov 0   ;;  %s999_s23 = smov 0  }
   0x6   :  { %s1001_s24 = smov 0   ;;  %s1003_s25 = smov 0  }
   0x7 LB: > { %s728_s4 = sadd.s32 4294967295, %s952_s25   ;;  %s729_s26 = sadd.s32 4294967294, %s952_s25   ;;  %s952_s25 = sphi %s1003_s25, %s20_s25   ;;  %s948_s24 = sphi %s1001_s24, %s1155_s24   ;;  %s944_s23 = sphi %s999_s23, %s1154_s23   ;;  %s940_s22 = sphi %s997_s22, %s1153_s22   ;;  %s936_s21 = sphi %s995_s21, %s1152_s21   ;;  %s932_s20 = sphi %s993_s20, %s1151_s20  }
   0x8   : > { %s32_s27 = sadd.s32 1, %s948_s24  ;;  %s153_s28 = sadd.s32 1, %s940_s22 }
   0x9   : > { %p34_p0 = scmp.ge.s32.totalorder %s32_s27, 2  ;;  %p163_p1 = scmp.ne.s32.totalorder %s940_s22, %s936_s21 }
   0xa   : > { %p164_p2 = scmp.eq.s32.totalorder %s728_s4, 1  ;;  %p169_p3 = scmp.ne.s32.totalorder %s936_s21, %s932_s20 }
   0xb   : > { %s1157_s27 = smov (%p34_p0, %s32_s27), 0  ;;  %p170_p5 = scmp.eq.s32.totalorder %s729_s26, 1 }
   0xc   : > { %p1033_p4 = por %p164_p2, %p163_p1  ;;  %s148_s30 = ssub.s32 %s948_s24, %s1157_s27 }
   0xd   : > { %p732_p6 = scmp.ge.s32.totalorder %s952_s25, 1  ;;  %p151_p7 = scmp.eq.s32.totalorder %s148_s30, 0 }
   0xe   : > { %p1040_p8 = por %p170_p5, %p169_p3  ;;  %p209_p9 = scmp.lt.s32.totalorder %s952_s25, 3 }
   0xf   : > { %s1046_s7 = scalar_select %p151_p7, %s940_s22, %s153_s28  }
  0x10   : > { %p210_p10 = pnand %p732_p6, %p209_p9 }
  0x11   : > { %v243_v1 = vlaneseq (!%p210_p10)  ;;  %v954_v2 = vmov (!%p210_p10), 0.0|0.0   ;;  %vm955_vm0 = vmmov (!%p210_p10), 0   ;;  %v956_v5 = vmov (!%p210_p10), 0.0   ;;  %p237_p11 = scmp.lt.s32.totalorder (!%p210_p10), %s944_s23, 1  ;;  %v421_v14 = vld [vmem:[%s1144_s1] sm:$0xff] (!%p210_p10)  ;;  %v537_v16 = vld [vmem:[%s1145_s2 + $0x10] sm:$0xff] (!%p210_p10) }
  0x12   : > { %213 = sbr.rel (%p210_p10) target bundleno = 709 (0x2c5), region = 40  ;;  %803 = vmatprep.subr.bf16.mxu1 (!%p210_p10), %v954_v2  ;;  %800 = vmatprep.subr.bf16.mxu0 (!%p210_p10), %v954_v2  ;;  %v957_v12 = vmov (!%p210_p10), 1.0|1.0   ;;  %vm264_vm8 = vcmask (!%p210_p10), 130048   ;;  %vm425_vm9 = vcmask (!%p210_p10), 31744   ;;  %v535_v15 = vld [vmem:[%s1145_s2] sm:$0xff] (!%p210_p10) }
  0x13   : > { %v244_v3 = vand.u32 (!%p210_p10), 127, %v243_v1  ;;  %v246_v4 = vshrl.u32 (!%p210_p10), %v243_v1, 7  ;;  %778 = vmatprep.mubr.msk.f32.mxu1 (!%p210_p10), %vm955_vm0, %v956_v5  ;;  %771 = vmatprep.mubr.msk.f32.mxu0 (!%p210_p10), %vm955_vm0, %v956_v5  ;;  %v958_v17 = vmov (!%p210_p10), 0   ;;  %v536_v18 = vld [vmem:[%s1145_s2 + $0x8] sm:$0xff] (!%p210_p10)  ;;  %v538_v19 = vld [vmem:[%s1145_s2 + $0x18] sm:$0xff] (!%p210_p10)  ;;  %vm438_vm10 = vcmask (!%p210_p10), 1043456  }
  0x14   : > { %872 = vset.pattern.permute.xlu0 (!%p210_p10), %v958_v17  ;;  %873 = vset.pattern.permute.xlu1 (!%p210_p10), %v958_v17  ;;  %v564_v20 = vld [vmem:[#allocation2] sm:$0x1] (!%p210_p10)  ;;  %v422_v29 = vld [vmem:[%s1144_s1 + $0x8] sm:$0xff] (!%p210_p10)  ;;  %v423_v30 = vld [vmem:[%s1144_s1 + $0x10] sm:$0xff] (!%p210_p10)  ;;  %vm574_vm12 = vcmask (!%p210_p10), 261120   ;;  %s235_s14 = sand.u32 (!%p210_p10), 1, %s936_s21  }
  0x15   : > { %v247_v6 = vadd.s32 (!%p210_p10), 8, %v246_v4  ;;  %v248_v7 = vmul.u32 (!%p210_p10), 4, %v246_v4  ;;  %v263_v11 = vcvt.s32.f32 (!%p210_p10), %v244_v3  ;;  %541 = vperm.xlu0 (!%p210_p10), %872, %v535_v15   ;;  %551 = vperm.xlu1 (!%p210_p10), %873, %v537_v16   ;;  %v416_v23 = vsub.s32 (!%p210_p10), 0, %v246_v4  ;;  %v424_v31 = vld [vmem:[%s1144_s1 + $0x18] sm:$0xff] (!%p210_p10)  ;;  %v563_v53 = vld [vmem:[%s1146_s3] sm:$0x1] (!%p210_p10) }
  0x16   : > { %v413_v26 = vcvt.s32.f32 (!%p210_p10), %v246_v4  ;;  %s748_s15 = sshll.u32 (!%p210_p10), %s944_s23, 4  ;;  %s236_s16 = scalar_lea.vmem (!%p210_p10), [#allocation3], %s235_s14  ;;  %vm648_vm13 = vcmask (!%p210_p10), 516096  }
  0x17   : > { %v249_v8 = vmul.u32 (!%p210_p10), 4, %v247_v6  ;;  %vm250_vm1 = vcmp.ge.s32.totalorder (!%p210_p10), %v244_v3, %v248_v7  ;;  %v252_v9 = vadd.s32 (!%p210_p10), 4, %v248_v7  ;;  %s664_s17 = sshll.u32 (!%p210_p10), %s236_s16, 4  ;;  %s1096_s4 = scalar_lea.hbm (!%p210_p10), %s1148_s5, %s748_s15  ;;  %s1098_s17 = int_to_ptr.vmem [resolvable:$true] %s664_s17 }
  0x18   : > { %s651_s26 = scalar_lea.sflag (!%p210_p10), [#allocation4], %s235_s14  ;;  %s959_s28 = smov (!%p210_p10), [#allocation3]  }
  0x19   : > { %vm251_vm2 = vcmp.ge.s32.totalorder %v244_v3, %v249_v8  ;;  %v253_v10 = vadd.s32 4, %v249_v8  ;;  %vm254_vm3 = vcmp.lt.s32.totalorder %v244_v3, %v252_v9  ;;  %s238_s8 = scalar_select %p237_p11, %s944_s23, 1  ;;  %546 = vperm.xlu0 %872, %v536_v18   ;;  %556 = vperm.xlu1 %873, %v538_v19  }
  0x1a   : > { %vm256_vm4 = vmand %vm250_vm1, %vm254_vm3  ;;  %s874_s23 = scalar_lea.vmem %s1098_s17, 16  ;;  %s878_s30 = sshll.u32 %s959_s28, 4  ;;  %s879_s30 = int_to_ptr.vmem [resolvable:$false] %s878_s30 }
  0x1b   : > { %vm255_vm5 = vcmp.lt.s32.totalorder %v244_v3, %v253_v10  ;;  %s242_s11 = scalar_lea.vmem %s1143_s0, %s238_s8  ;;  %p875_p12 = scmp.ne.s32.totalorder %s1098_s17, %s874_s23 }
  0x1c   : > { %vm257_vm6 = vmand %vm251_vm2, %vm255_vm5  ;;  %v262_v13 = vld [vmem:[%s242_s11] sm:$0x1]  ;;  %s880_s8 = scalar_lea.vmem %s879_s30, 32  ;;  %p881_p1 = scmp.lt.s32.totalorder %s1098_s17, %s879_s30 }
  0x1d   : > { %vm801_vm7 = vmpackc.low %vm257_vm6, %vm256_vm4  ;;  %567 = vperm.xlu0 %872, %v564_v20   ;;  %p876_p13 = pnand %p875_p12, %p1033_p4  ;;  %p882_p2 = scmp.lt.s32.totalorder %s880_s8, %s874_s23 }
  0x1e   : > { %805 = vmatpush3.bf16.msk.msra.mxu1 %vm801_vm7, %v957_v12  ;;  %802 = vmatpush3.bf16.msk.msra.mxu0 %vm801_vm7, %v957_v12 }
  0x1f   : > { %806 = vmatprep.subr.bf16.mxu1 %v954_v2  ;;  %p877_p0 = pneg %p876_p13  ;;  %p883_p3 = por %p882_p2, %p881_p1 }
  0x21   : > { %779 = vmatmul.mubr.msk.f32.vlgmr.msra.gmra.mrb[0].mxu1 %vm264_vm8, %v263_v11  ;;  %772 = vmatmul.mubr.msk.f32.vlgmr.msra.gmra.mrb[0].mxu0 %vm264_vm8, %v262_v13  ;;  %p884_p5 = pnand %p883_p3, %p877_p0 }
  0x22   : > { %797 = vmatprep.mubr.msk.f32.mxu1 %vm955_vm0, %v956_v5  ;;  %783 = vmatprep.mubr.msk.f32.mxu0 %vm425_vm9, %v421_v14 }
  0x94   : > { %v542_v34 = vpop.permute.xlu0 %541  ;;  %v552_v37 = vpop.permute.xlu1 %551 }
  0x98   : > { %v547_v40 = vpop.permute.xlu0 %546  ;;  %v557_v49 = vpop.permute.xlu1 %556 }
  0x9c   : > { %v568_v54 = vpop.permute.xlu0 %567 }
  0x9d   : > { %v573_v55 = vrot.slane %v568_v54, %v416_v23 }
  0xf4   : > { %v407_v21 = vpop.f32.mrb[0].mxu1  ;;  %v334_v32 = vpop.f32.mrb[0].mxu0 }
  0xf5   : > { %v411_v22 = vmul.f32 4.0, %v407_v21  ;;  %v780_v24 = vpop.f32.mrb[1].mxu1  ;;  %v773_v33 = vpop.f32.mrb[1].mxu0  ;;  %v530_v35 = vrot.slane %v334_v32, %v416_v23 }
  0xf7   : > { %v412_v25 = vsub.f32 %v263_v11, %v411_v22 }
  0xf9   : > { %v417_v27 = vrot.slane %v412_v25, %v416_v23 }
  0xfb   : > { %vm418_vm11 = vcmp.eq.f32.partialorder %v413_v26, %v417_v27 }
  0xfc   : > { %v741_v28 = vsel %vm418_vm11, 1.0, %v956_v5 }
  0xfd   : > { %781 = vmatprep.subr.msk.mxu0 %vm438_vm10, %v741_v28 }
  0xfe   : > { %782 = vmatpush3.msk.msra.mxu0 %vm438_vm10, %v741_v28 }
  0xff   : > { %784 = vmatmul.mubr.msk.f32.vlgmr.msra.gmra.mrb[2].mxu0 %vm425_vm9, %v422_v29 }
 0x100   : > { %786 = vmatprep.mubr.msk.f32.mxu0 %vm425_vm9, %v423_v30 }
 0x103   : > { %787 = vmatmul.mubr.msk.f32.gmra.mrb[4].mxu0 %vm425_vm9, %v424_v31 }
 0x1d2   : > { %v785_v36 = vpop.f32.mrb[2].mxu0 }
 0x1d3   : > { %v532_v38 = vmul.f32 %v785_v36, %v530_v35  ;;  %v508_v39 = vpop.f32.mrb[3].mxu0 }
 0x1d4   : > { %v531_v41 = vmul.f32 %v530_v35, %v508_v39 }
 0x1d5   : > { %v560_v42 = vadd.f32 %v547_v40, %v532_v38 }
 0x1d6   : > { %v559_v43 = vadd.f32 %v542_v34, %v531_v41  ;;  %v788_v44 = vpop.f32.mrb[4].mxu0 }
 0x1d7   : > { %v534_v45 = vmul.f32 %v788_v44, %v530_v35  ;;  %v518_v46 = vpop.f32.mrb[5].mxu0 }
 0x1d8   : > { %v807_v47 = vpack.c.bf16 %v560_v42, %v559_v43  ;;  %v533_v48 = vmul.f32 %v530_v35, %v518_v46 }
 0x1d9   : > { %v562_v50 = vadd.f32 %v557_v49, %v534_v45 }
 0x1da   : > { %v561_v51 = vadd.f32 %v552_v37, %v533_v48  ;;  %808 = vmatpush3.bf16.msra.mxu1 %v807_v47 }
 0x1db   : > { %809 = vmatprep.subr.bf16.mxu1 %v954_v2 }
 0x1dc   : > { %v810_v52 = vpack.c.bf16 %v562_v50, %v561_v51 }
 0x1de   : > { %811 = vmatpush3.bf16.msra.mxu1 %v810_v52 }
 0x1e1   : > { %798 = vmatmul.mubr.msk.f32.vlgmr.msra.gmra.mrb[2].mxu1 %vm574_vm12, %v563_v53 }
 0x2b4   : > { %v644_v56 = vpop.f32.mrb[2].mxu1 }
 0x2b5   : > { %v645_v57 = vadd.f32 %v644_v56, %v573_v55  ;;  %v799_v58 = vpop.f32.mrb[3].mxu1 }
 0x2b7   : > { %649 = vst.msk [vmem:[%s236_s16] sm:$0x1] %vm648_vm13, %v645_v57 }
 0x2b8   : > { %887 = shalt.err (!%p884_p5)
}
 0x2b9   : > { %s888_s9 = scalar_lea.hbm %s1096_s4, 16  ;;  %s892_s12 = scalar_lea.hbm %s1148_s5, 32 }
 0x2ba   : > { %p889_p6 = scmp.ne.s32.totalorder %s1096_s4, %s888_s9  ;;  %p893_p10 = scmp.lt.u32.totalorder %s1096_s4, %s1148_s5 }
 0x2bb   : > { %p894_p11 = scmp.lt.u32.totalorder %s892_s12, %s888_s9  ;;  %p896_p13 = scmp.lt.u32.totalorder %s888_s9, %s1096_s4 }
 0x2bc   : > { %p890_p7 = pnand %p889_p6, %p1033_p4 }
 0x2bd   : > { %p895_p12 = por %p894_p11, %p893_p10 }
 0x2be   : > { %p891_p9 = pneg %p890_p7 }
 0x2bf   : > { %p897_p0 = por %p896_p13, %p895_p12 }
 0x2c1   : > { %p898_p1 = pnand %p897_p0, %p891_p9 }
 0x2c3   : > { %901 = shalt.err (!%p898_p1)
}
 0x2c4   : > { %812 = dma.vmem_to_hbm [thread:$0]  (%p1033_p4), %s1098_s17, 16, %s1096_s4, %s651_s26  }
 0x2c5 PF: > { %p818_p2 = scmp.ge.s32.totalorder %s952_s25, 2  ;;  %s676_s15 = sand.u32 1, %s932_s20  }
 0x2c6   : > { %s677_s16 = scalar_lea.sflag [#allocation4], %s676_s15 }
 0x2c7   : > { %p815_p3 = pnand %p818_p2, %p1040_p8 }
 0x2c9   : > { %927 = dma.done.wait (!%p815_p3), %s677_s16, 16  }
 0x2ca   : > { %929 = vsyncadd (!%p815_p3), %s677_s16, 4294967280  ;;  %s20_s25 = sadd.s32 1, %s952_s25   ;;  %s1151_s20 = smov %s936_s21 }
 0x2cb   : > { %p17_p5 = scmp.ge.s32.totalorder %s20_s25, 4   ;;  %s1152_s21 = smov %s940_s22 }
 0x2cc   : > { %s1153_s22 = smov %s1046_s7  ;;  %s1154_s23 = smov %s948_s24 }
 0x2cd   : > { %s1155_s24 = smov %s1157_s27  ;;  %19 = sbr.rel (!%p17_p5) target bundleno = 7 (0x7), region = 75 }
 0x2d4   :  { %681 = vsyncpa [#allocation4], 1 }
 0x2d5   :  { %683 = vsyncpa [#allocation4 + $0x1], 1 }

</bundles_post_ra>
